<compile_context>
chip_gen: v7x
topology: tpu7x:2x2x1
jax: 0.10.0
libtpu: 0.0.40
codegen_flags: <defaults>
</compile_context>

<pallas_src>
import jax
import jax.numpy as jnp
from jax.experimental import pallas as pl
from jax.experimental.pallas import tpu as pltpu


def _dlinear_fused_kernel(x_ref, w_ref, bias_ref, o_ref):
    """One lane tile of the fused DLinear forward.

    x_ref   : (L, TN)  input slab tile (time on sublanes, B*C on lanes)
    w_ref   : (P, L)   fused effective weight  W_s + (W_t - W_s) @ (M/K)
    bias_ref: (P, 1)   b_seasonal + b_trend
    o_ref   : (P, TN)  output tile
    """
    out = jnp.dot(w_ref[...], x_ref[...], preferred_element_type=jnp.float32)
    out = out + bias_ref[...].astype(jnp.float32)
    o_ref[...] = out.astype(o_ref.dtype)


def _moving_average_operator(seq_len, kernel_size):
    """(L, L) operator M (already including 1/K) with trend = M @ x.

    M[t, s] = multiplicity of x[s] in the K-wide window centred at t, divided
    by K.  Edge windows reuse x[0] / x[L-1], matching the PyTorch
    repeat+cat replicate padding followed by AvgPool1d(K, stride=1).
    """
    pad = (kernel_size - 1) // 2
    t = jnp.arange(seq_len, dtype=jnp.int32)[:, None]
    s = jnp.arange(seq_len, dtype=jnp.int32)[None, :]
    band = ((s >= t - pad) & (s <= t + pad)).astype(jnp.float32)
    front = jnp.where(s == 0, jnp.maximum(pad - t, 0), 0).astype(jnp.float32)
    back = jnp.where(s == seq_len - 1,
                     jnp.maximum(t + pad - (seq_len - 1), 0), 0).astype(jnp.float32)
    return (band + front + back) * (1.0 / kernel_size)


def dlinear_forward(x, w_seasonal, b_seasonal, w_trend, b_trend, kernel_size,
                    matmul_dtype=None):
    """DLinear forward:  x (B, L, C) -> (B, pred_len, C)."""
    B, L, C = x.shape
    P = w_seasonal.shape[0]
    assert kernel_size % 2 == 1, "DLinear requires an odd moving-average kernel"
    assert L >= 2
    assert w_seasonal.shape == (P, L) and w_trend.shape == (P, L)

    out_dtype = x.dtype
    mm_dtype = out_dtype if matmul_dtype is None else matmul_dtype

    # ---- Parameter-side fusion (input independent, done once at trace time).
    m_op = _moving_average_operator(L, kernel_size)                     # (L, L)
    w_eff = (w_seasonal.astype(jnp.float32)
             + jnp.dot(w_trend.astype(jnp.float32) - w_seasonal.astype(jnp.float32),
                       m_op, precision="highest"))                      # (P, L)
    bias = (b_seasonal.astype(jnp.float32)
            + b_trend.astype(jnp.float32)).reshape(P, 1)                # (P, 1)

    # ---- Lane-dense slab: fold batch into the channel (lane) axis.
    N = B * C
    x2 = jnp.transpose(x, (1, 0, 2)).reshape(L, N)

    # Pad the lane axis to a multiple of 128 (unmasked full-lane stores) and
    # choose a lane tile up to 1024 wide (multiple of 128) so the DMA
    # pipeline runs efficient transfers and grid steps amortise overhead.
    n_pad = pl.cdiv(N, 128) * 128
    tn = min(n_pad, 1024)
    n_pad = pl.cdiv(n_pad, tn) * tn
    if n_pad > N:
        x2 = jnp.pad(x2, ((0, 0), (0, n_pad - N)))
    grid_n = n_pad // tn

    x2 = x2.astype(mm_dtype)
    w_in = w_eff.astype(mm_dtype)

    # VMEM budget: double-buffered x / out tiles + resident weight & bias,
    # with headroom.  Capped to the v7x physical 64 MiB.
    itm = jnp.dtype(mm_dtype).itemsize
    per_step = 2 * L * tn * itm + 2 * P * tn * jnp.dtype(out_dtype).itemsize \
        + P * L * itm + P * 4
    vmem_limit = int(min(max(per_step * 2, 16 * 1024 * 1024), 64 * 1024 * 1024))

    flops = 2 * P * L * n_pad
    bytes_accessed = itm * (L * n_pad + P * L) + 4 * P \
        + jnp.dtype(out_dtype).itemsize * P * n_pad

    out2 = pl.pallas_call(
        _dlinear_fused_kernel,
        out_shape=jax.ShapeDtypeStruct((P, n_pad), out_dtype),
        grid_spec=pltpu.PrefetchScalarGridSpec(
            num_scalar_prefetch=0,
            grid=(grid_n,),
            in_specs=[
                pl.BlockSpec((L, tn), lambda j: (0, j)),   # x slab tile
                pl.BlockSpec((P, L), lambda j: (0, 0)),    # W_eff (resident)
                pl.BlockSpec((P, 1), lambda j: (0, 0)),    # combined bias
            ],
            out_specs=pl.BlockSpec((P, tn), lambda j: (0, j)),
        ),
        compiler_params=pltpu.CompilerParams(
            dimension_semantics=("parallel",),
            vmem_limit_bytes=vmem_limit,
        ),
        cost_estimate=pl.CostEstimate(
            flops=flops, transcendentals=0, bytes_accessed=bytes_accessed),
    )(x2, w_in, bias)

    # (P, n_pad) -> drop lane padding -> (B, P, C) PyTorch output layout.
    return out2[:, :N].reshape(P, B, C).transpose(1, 0, 2)


def _dlinear_reference(x, w_s, b_s, w_t, b_t, kernel_size):
    """Plain-JAX replication of the PyTorch DLinear forward (the spec)."""
    B, L, C = x.shape
    pad = (kernel_size - 1) // 2
    front = jnp.repeat(x[:, 0:1, :], pad, axis=1)
    end = jnp.repeat(x[:, -1:, :], pad, axis=1)
    xp = jnp.concatenate([front, x, end], axis=1)
    trend = jnp.stack(
        [xp[:, i:i + kernel_size, :].mean(axis=1) for i in range(L)], axis=1)
    seasonal = x - trend
    s_out = jnp.einsum("blc,pl->bpc", seasonal, w_s,
                       precision="highest") + b_s[None, :, None]
    t_out = jnp.einsum("blc,pl->bpc", trend, w_t,
                       precision="highest") + b_t[None, :, None]
    return s_out + t_out


if __name__ == "__main__":
    # Small DLinear config: batch=4, seq_len=32, pred_len=16, enc_in=8, K=5.
    B, L, P, C, K = 4, 32, 16, 8, 5

    key = jax.random.PRNGKey(0)
    kx, kws, kwt, kbs, kbt = jax.random.split(key, 5)
    x = jax.random.normal(kx, (B, L, C), dtype=jnp.float32)
    # Parameters. (The PyTorch module initialises the weights to 1/seq_len *
    # ones; random values exercise the seasonal / trend paths independently.)
    w_s = jax.random.normal(kws, (P, L), dtype=jnp.float32) / L
    w_t = jax.random.normal(kwt, (P, L), dtype=jnp.float32) / L
    b_s = 0.1 * jax.random.normal(kbs, (P,), dtype=jnp.float32)
    b_t = 0.1 * jax.random.normal(kbt, (P,), dtype=jnp.float32)

    out = dlinear_forward(x, w_s, b_s, w_t, b_t, K)
    out = jax.block_until_ready(out)

    ref = _dlinear_reference(x, w_s, b_s, w_t, b_t, K)

    assert out.shape == (B, P, C), (out.shape, (B, P, C))
    max_err = float(jnp.max(jnp.abs(out - ref)))
    # Tolerance covers f32 MXU matmul behaviour and the W_eff algebraic
    # re-association; semantic bugs are >> 1e-2.
    assert max_err < 2e-3, max_err
    print("KERNEL_OK")
</pallas_src>

<mosaic_0001>
module attributes {stable_mosaic.version = 11 : i64} {
  func.func @_dlinear_fused_kernel(%arg0: i32, %arg1: memref<32x128xf32, #tpu.memory_space<vmem>>, %arg2: memref<16x32xf32, #tpu.memory_space<vmem>>, %arg3: memref<16x1xf32, #tpu.memory_space<vmem>>, %arg4: memref<16x128xf32, #tpu.memory_space<vmem>>) attributes {dimension_semantics = [#tpu.dimension_semantics<parallel>], iteration_bounds = array<i64: 1>, scalar_prefetch = 0 : i64, scratch_operands = 0 : i64, tpu.core_type = #tpu.core_type<tc>, window_params = [{transform_indices = @transform_0, window_bounds = array<i64: 32, 128>}, {pipeline_mode = #tpu.pipeline_mode<synchronous>, transform_indices = @transform_1, window_bounds = array<i64: 16, 32>}, {pipeline_mode = #tpu.pipeline_mode<synchronous>, transform_indices = @transform_2, window_bounds = array<i64: 16, 1>}, {transform_indices = @transform_3, window_bounds = array<i64: 16, 128>}]} {
    %c0 = arith.constant 0 : index
    %c0_0 = arith.constant 0 : index
    %0 = vector.load %arg2[%c0, %c0_0] : memref<16x32xf32, #tpu.memory_space<vmem>>, vector<16x32xf32>
    %c0_1 = arith.constant 0 : index
    %c0_2 = arith.constant 0 : index
    %1 = vector.load %arg1[%c0_1, %c0_2] : memref<32x128xf32, #tpu.memory_space<vmem>>, vector<32x128xf32>
    %cst = arith.constant dense<0.000000e+00> : vector<16x128xf32>
    %2 = tpu.matmul %0, %1, %cst {dimension_numbers = #tpu.dot_dimension_numbers<[1], [0], [0], [1], [0, 0, 1, 1], [], []>} : vector<16x32xf32>, vector<32x128xf32>, vector<16x128xf32> -> vector<16x128xf32>
    %c0_3 = arith.constant 0 : index
    %c0_4 = arith.constant 0 : index
    %3 = vector.load %arg3[%c0_3, %c0_4] : memref<16x1xf32, #tpu.memory_space<vmem>>, vector<16x1xf32>
    %4 = vector.broadcast %3 : vector<16x1xf32> to vector<16x128xf32>
    %5 = arith.addf %2, %4 : vector<16x128xf32>
    %c0_5 = arith.constant 0 : index
    %c0_6 = arith.constant 0 : index
    %6 = vector.load %arg4[%c0_5, %c0_6] : memref<16x128xf32, #tpu.memory_space<vmem>>, vector<16x128xf32>
    tpu.vector_store %arg4[%c0_5, %c0_6], %5 {strides = array<i32>} : memref<16x128xf32, #tpu.memory_space<vmem>>, vector<16x128xf32>,
    return
  }
  func.func @transform_0(%arg0: i32) -> (i32, i32) {
    %c0_i32 = arith.constant 0 : i32
    %c0_i32_0 = arith.constant 0 : i32
    return %c0_i32, %arg0 : i32, i32
  }
  func.func @transform_1(%arg0: i32) -> (i32, i32) {
    %c0_i32 = arith.constant 0 : i32
    %c0_i32_0 = arith.constant 0 : i32
    %c0_i32_1 = arith.constant 0 : i32
    return %c0_i32, %c0_i32_0 : i32, i32
  }
  func.func @transform_2(%arg0: i32) -> (i32, i32) {
    %c0_i32 = arith.constant 0 : i32
    %c0_i32_0 = arith.constant 0 : i32
    %c0_i32_1 = arith.constant 0 : i32
    return %c0_i32, %c0_i32_0 : i32, i32
  }
  func.func @transform_3(%arg0: i32) -> (i32, i32) {
    %c0_i32 = arith.constant 0 : i32
    %c0_i32_0 = arith.constant 0 : i32
    return %c0_i32, %arg0 : i32, i32
  }
}

</mosaic_0001>

<bundles_post_ra>
// kernel: tpu_custom_call.1
= control target key start
LH: loop header
LB: loop body
LE: loop exit
PB: predicated region body
PF: predicated region fallthrough
CT: control target
= control target key end

     0   :  { %8 = vsyncpa [#allocation3], 0  ;;  %s298_s0 = inlined_call_operand.hbm [shape: f32[32,128], index: 0, kind: input, shape index: {}]   ;;  %s299_s1 = inlined_call_operand.vmem [shape: f32[16,32], index: 1, kind: input, shape index: {}]   ;;  %s300_s2 = inlined_call_operand.vmem [shape: f32[16,1], index: 2, kind: input, shape index: {}]   ;;  %s301_s3 = inlined_call_operand.hbm [shape: f32[16,128], index: 3, kind: output, shape index: {}]  }
   0x1   :  { %9 = vsyncpa [#allocation4], 0  ;;  %s229_s12 = smov [#allocation2]   ;;  %s181_s16 = scalar_lea.hbm %s298_s0, 512 }
   0x2   :  { %s15_s13 = sshll.u32 %s229_s12, 4  ;;  %p182_p0 = scmp.ne.s32.totalorder %s298_s0, %s181_s16  ;;  %s16_s13 = int_to_ptr.vmem [resolvable:$true] %s15_s13 }
   0x3   :  { %p185_p1 = scmp.lt.u32.totalorder %s181_s16, %s298_s0 }
   0x5   :  { %p187_p2 = pnand %p185_p1, %p182_p0 }
   0x7   :  { %190 = shalt.err (!%p187_p2)
}
   0x8   :  { %s191_s21 = scalar_lea.vmem %s16_s13, 512  ;;  %p196_p4 = scmp.lt.s32.totalorder %s16_s13, %s16_s13 }
   0x9   :  { %p192_p3 = scmp.ne.s32.totalorder %s16_s13, %s191_s21  ;;  %p197_p5 = scmp.lt.s32.totalorder %s191_s21, %s191_s21 }
   0xb   :  { %p198_p6 = por %p197_p5, %p196_p4 }
   0xd   :  { %p199_p7 = pnand %p198_p6, %p192_p3 }
   0xf   :  { %202 = shalt.err (!%p199_p7)
}
  0x10   :  { %s230_s22 = smov 128   ;;  %s231_s23 = smov 8  }
  0x11   :  { %21 = dma.hbm_to_vmem [thread:$0]  %s298_s0, 512, %s16_s13, [#allocation3], %s230_s22, %s230_s22, %s231_s23  }
  0x12   :  { %225 = dma.done.wait [#allocation3], 512  }
  0x13   :  { %226 = vsyncadd [#allocation3], 4294966784  ;;  %v232_v0 = vmov 0   ;;  %vm47_vm0 = vcmask 261120   ;;  %v31_v1 = vld [vmem:[#allocation2] sm:$0xff]  ;;  %v32_v2 = vld [vmem:[#allocation2 + $0x8] sm:$0xff] }
  0x14   :  { %180 = vset.pattern.permute.xlu0 %v232_v0  ;;  %v33_v3 = vld [vmem:[#allocation2 + $0x10] sm:$0xff]  ;;  %v167_v4 = vpack.c.bf16 %v32_v2, %v31_v1  ;;  %v34_v5 = vld [vmem:[#allocation2 + $0x18] sm:$0xff]  ;;  %v29_v6 = vld [vmem:[%s299_s1] sm:$0xff]  ;;  %s233_s6 = smov [#allocation5]  }
  0x15   :  { %v171_v7 = vpack.c.bf16 %v34_v5, %v33_v3  ;;  %164 = vmatprep.mubr.msk.f32.mxu0 %vm47_vm0, %v29_v6  ;;  %v35_v8 = vld [vmem:[%s300_s2] sm:$0xff]  ;;  %v36_v9 = vld [vmem:[%s300_s2 + $0x8] sm:$0xff]  ;;  %s136_s7 = sshll.u32 %s233_s6, 4  ;;  %s137_s7 = int_to_ptr.vmem [resolvable:$true] %s136_s7 }
  0x16   :  { %168 = vmatprep.subr.bf16.mxu0 %v167_v4  ;;  %39 = vperm.xlu0 %180, %v35_v8   ;;  %v30_v10 = vld [vmem:[%s299_s1 + $0x8] sm:$0xff]  ;;  %s203_s2 = scalar_lea.vmem %s137_s7, 256  ;;  %p208_p9 = scmp.lt.s32.totalorder %s137_s7, %s137_s7 }
  0x17   :  { %170 = vmatpush3.bf16.msra.mxu0 %v167_v4  ;;  %p204_p8 = scmp.ne.s32.totalorder %s137_s7, %s203_s2  ;;  %p209_p10 = scmp.lt.s32.totalorder %s203_s2, %s203_s2 }
  0x18   :  { %172 = vmatprep.subr.bf16.mxu0 %v171_v7 }
  0x19   :  { %p210_p11 = por %p209_p10, %p208_p9 }
  0x1a   :  { %44 = vperm.xlu0 %180, %v36_v9  }
  0x1b   :  { %174 = vmatpush3.bf16.msra.mxu0 %v171_v7  ;;  %p211_p12 = pnand %p210_p11, %p204_p8 }
  0x1e   :  { %165 = vmatmul.mubr.msk.f32.vlgmr.msra.gmra.mrb[0].mxu0 %vm47_vm0, %v30_v10 }
  0x95   :  { %v40_v11 = vpop.permute.xlu0 %39 }
  0x99   :  { %v45_v12 = vpop.permute.xlu0 %44 }
  0xf1   :  { %v166_v13 = vpop.f32.mrb[0].mxu0 }
  0xf2   :  { %v126_v14 = vadd.f32 %v166_v13, %v45_v12  ;;  %v120_v15 = vpop.f32.mrb[1].mxu0 }
  0xf3   :  { %v121_v16 = vadd.f32 %v120_v15, %v40_v11 }
  0xf4   :  { %130 = vst [vmem:[#allocation5 + $0x8] sm:$0xff] %v126_v14 }
  0xf5   :  { %129 = vst [vmem:[#allocation5] sm:$0xff] %v121_v16 }
  0xf6   :  { %214 = shalt.err (!%p211_p12)
}
  0xf7   :  { %s215_s9 = scalar_lea.hbm %s301_s3, 256 }
  0xf8   :  { %p216_p13 = scmp.ne.s32.totalorder %s301_s3, %s215_s9  ;;  %p219_p0 = scmp.lt.u32.totalorder %s215_s9, %s301_s3 }
  0xfa   :  { %p221_p1 = pnand %p219_p0, %p216_p13 }
  0xfc   :  { %224 = shalt.err (!%p221_p1)
}
  0xfd   :  { %142 = dma.vmem_to_hbm [thread:$0]  %s137_s7, 256, %s301_s3, [#allocation4], %s230_s22, %s230_s22, %s231_s23  }
  0xfe   :  { %227 = dma.done.wait [#allocation4], 256  }
  0xff   :  { %228 = vsyncadd [#allocation4], 4294967040 }
 0x100   :  { %146 = vsyncpa [#allocation3], 1 }
 0x101   :  { %147 = vsyncpa [#allocation4], 1 }

</bundles_post_ra>
